<compile_context>
chip_gen: v6e
topology: v6e:2x2x1
jax: 0.10.0
libtpu: 0.0.40
codegen_flags: <defaults>
</compile_context>

<pallas_src>
import jax
import jax.numpy as jnp
from jax.experimental import pallas as pl
from jax.experimental.pallas import tpu as pltpu

EPS = 1e-5


def _round_up(n, m):
    return ((n + m - 1) // m) * m


def _make_kernel(true_b, tile_b, b_pad):
    """Build the 3-pass kernel. true_b/tile_b/b_pad are static Python ints."""
    inv_b = 1.0 / float(true_b)
    needs_mask = (b_pad != true_b)

    # stats_ref (8,128) f32 layout:
    #   row 0: BN1 sum(h1)       [0:64]     row 4: BN1 scale  [0:64]
    #   row 1: BN1 sum(h1^2)     [0:64]     row 5: BN1 shift  [0:64]
    #   row 2: BN2 sum(h2)       [0:32]     row 6: BN2 scale  [0:32]
    #   row 3: BN2 sum(h2^2)     [0:32]     row 7: BN2 shift  [0:32]
    def kernel(x_ref, w1_ref, w2_ref, vecs_ref, out_ref, stats_ref):
        p = pl.program_id(0)   # pass index (0,1,2)
        t = pl.program_id(1)   # batch tile index

        # ----- one-time work per pass (runs before the per-tile compute) -----
        @pl.when((p == 0) & (t == 0))
        def _zero_stats():
            stats_ref[...] = jnp.zeros_like(stats_ref)

        @pl.when((p == 1) & (t == 0))
        def _finalize_bn1():
            g = vecs_ref[0:1, 0:64]
            be = vecs_ref[1:2, 0:64]
            mean = stats_ref[0:1, 0:64] * inv_b
            var = stats_ref[1:2, 0:64] * inv_b - mean * mean   # biased; eps guards
            scale = jax.lax.rsqrt(var + EPS) * g
            stats_ref[4:5, 0:64] = scale
            stats_ref[5:6, 0:64] = be - mean * scale

        @pl.when((p == 2) & (t == 0))
        def _finalize_bn2():
            g = vecs_ref[2:3, 0:32]
            be = vecs_ref[3:4, 0:32]
            mean = stats_ref[2:3, 0:32] * inv_b
            var = stats_ref[3:4, 0:32] * inv_b - mean * mean
            scale = jax.lax.rsqrt(var + EPS) * g
            stats_ref[6:7, 0:32] = scale
            stats_ref[7:8, 0:32] = be - mean * scale

        # ----- shared per-tile compute (needed by every pass) -----
        x = x_ref[...].astype(jnp.float32)
        h1 = jnp.dot(x, w1_ref[...], preferred_element_type=jnp.float32)

        if needs_mask:
            row = t * tile_b + jax.lax.broadcasted_iota(jnp.int32, (tile_b, 1), 0)
            mask = (row < true_b).astype(jnp.float32)
        else:
            mask = None

        def masked(h):
            return h if mask is None else h * mask

        @pl.when(p == 0)
        def _pass0():
            hm = masked(h1)
            stats_ref[0:1, 0:64] += jnp.sum(hm, axis=0, keepdims=True)
            stats_ref[1:2, 0:64] += jnp.sum(hm * h1, axis=0, keepdims=True)

        @pl.when(p == 1)
        def _pass1():
            a1 = jnp.maximum(h1 * stats_ref[4:5, 0:64] + stats_ref[5:6, 0:64], 0.0)
            h2 = jnp.dot(a1, w2_ref[...], preferred_element_type=jnp.float32)
            hm = masked(h2)
            stats_ref[2:3, 0:32] += jnp.sum(hm, axis=0, keepdims=True)
            stats_ref[3:4, 0:32] += jnp.sum(hm * h2, axis=0, keepdims=True)

        @pl.when(p == 2)
        def _pass2():
            a1 = jnp.maximum(h1 * stats_ref[4:5, 0:64] + stats_ref[5:6, 0:64], 0.0)
            h2 = jnp.dot(a1, w2_ref[...], preferred_element_type=jnp.float32)
            a2 = jnp.maximum(h2 * stats_ref[6:7, 0:32] + stats_ref[7:8, 0:32], 0.0)
            w3r = vecs_ref[4:5, 0:32]   # (1, 32) row vector
            b3 = vecs_ref[5:6, 0:1]     # (1, 1) scalar
            # fc3 transposed: (1,32) . (TILE_B,32)^T -> lane-dense (1, TILE_B)
            logits = jax.lax.dot_general(
                w3r, a2,
                dimension_numbers=(((1,), (1,)), ((), ())),
                preferred_element_type=jnp.float32) + b3
            out_ref[...] = (jax.nn.sigmoid(logits) * 100.0).astype(out_ref.dtype)

    return kernel


def pack_vecs(g1, be1, g2, be2, w3, b3):
    """Pack all small per-feature vectors into one lane/sublane-aligned (8,128) array."""
    vecs = jnp.zeros((8, 128), jnp.float32)
    vecs = vecs.at[0, :64].set(g1.reshape(-1))
    vecs = vecs.at[1, :64].set(be1.reshape(-1))
    vecs = vecs.at[2, :32].set(g2.reshape(-1))
    vecs = vecs.at[3, :32].set(be2.reshape(-1))
    vecs = vecs.at[4, :32].set(w3.reshape(-1))   # w3 is (32,1) -> row vector
    vecs = vecs.at[5, 0].set(b3.reshape(-1)[0])
    return vecs


def sleep_score_forward(x, params, tile_b=1024):
    """Forward pass. params follows the PyTorch module layout; fc1/fc2 biases are
    accepted but unused (mathematically cancelled by training-mode BatchNorm)."""
    w1, _b1, g1, be1, w2, _b2, g2, be2, w3, b3 = params
    vecs = pack_vecs(g1, be1, g2, be2, w3, b3)

    B, input_size = x.shape
    x = x.astype(jnp.float32)

    # Tile sizing: single (sublane-rounded) tile for small B, else 128-aligned tiles
    # so the lane-dense (1, tile_b) output block satisfies the (8,128) constraint.
    b_single = _round_up(max(B, 2), 8)
    if b_single <= tile_b:
        tile_b = b_single
        num_tiles = 1
    else:
        assert tile_b % 128 == 0, "tile_b must be a multiple of 128 when num_tiles > 1"
        num_tiles = pl.cdiv(B, tile_b)
    b_pad = num_tiles * tile_b
    if b_pad != B:
        # Zero rows contribute exactly 0 to BN1 stats (no fc1 bias); BN2 stats and
        # the output are masked / sliced inside the kernel & wrapper.
        x = jnp.pad(x, ((0, b_pad - B), (0, 0)))

    kernel = _make_kernel(true_b=B, tile_b=tile_b, b_pad=b_pad)

    flops = B * (3 * 2 * input_size * 64 + 2 * 2 * 64 * 32 + 2 * 32)
    bytes_accessed = (3 * b_pad * input_size * 4 + b_pad * 4
                      + 3 * (input_size * 64 + 64 * 32 + 8 * 128) * 4)
    cost = pl.CostEstimate(flops=int(flops), transcendentals=int(B),
                           bytes_accessed=int(bytes_accessed))

    out = pl.pallas_call(
        kernel,
        out_shape=jax.ShapeDtypeStruct((1, b_pad), jnp.float32),
        grid_spec=pltpu.PrefetchScalarGridSpec(
            num_scalar_prefetch=0,
            grid=(3, num_tiles),                 # pass axis outermost (sequential)
            in_specs=[
                pl.BlockSpec((tile_b, input_size), lambda p, t: (t, 0)),
                pl.BlockSpec((input_size, 64), lambda p, t: (0, 0)),
                pl.BlockSpec((64, 32), lambda p, t: (0, 0)),
                pl.BlockSpec((8, 128), lambda p, t: (0, 0)),
            ],
            out_specs=pl.BlockSpec((1, tile_b), lambda p, t: (0, t)),
            scratch_shapes=[pltpu.VMEM((8, 128), jnp.float32)],
        ),
        compiler_params=pltpu.CompilerParams(
            dimension_semantics=("arbitrary", "arbitrary"),
            vmem_limit_bytes=32 * 1024 * 1024,
        ),
        cost_estimate=cost,
    )(x, w1, w2, vecs)

    return out[0, :B].reshape(B, 1)


def init_params(key, input_size=20):
    ks = jax.random.split(key, 3)

    def linear(k, fan_in, fan_out):
        bound = 1.0 / (fan_in ** 0.5)
        kw, kb = jax.random.split(k)
        w = jax.random.uniform(kw, (fan_in, fan_out), jnp.float32, -bound, bound)
        b = jax.random.uniform(kb, (1, fan_out), jnp.float32, -bound, bound)
        return w, b

    w1, b1 = linear(ks[0], input_size, 64)
    w2, b2 = linear(ks[1], 64, 32)
    w3, b3 = linear(ks[2], 32, 1)
    # BatchNorm affine params (PyTorch default init: weight=1, bias=0)
    g1, be1 = jnp.ones((1, 64), jnp.float32), jnp.zeros((1, 64), jnp.float32)
    g2, be2 = jnp.ones((1, 32), jnp.float32), jnp.zeros((1, 32), jnp.float32)
    return (w1, b1, g1, be1, w2, b2, g2, be2, w3, b3)


def reference_forward(x, params):
    # Faithful to the PyTorch module (includes the fc1/fc2 biases; BN cancels them).
    w1, b1, g1, be1, w2, b2, g2, be2, w3, b3 = params

    def bn(h, g, b):
        m = jnp.mean(h, axis=0, keepdims=True)
        v = jnp.mean((h - m) ** 2, axis=0, keepdims=True)
        return (h - m) / jnp.sqrt(v + EPS) * g + b

    h = jnp.maximum(bn(x @ w1 + b1, g1, be1), 0.0)
    h = jnp.maximum(bn(h @ w2 + b2, g2, be2), 0.0)
    return jax.nn.sigmoid(h @ w3 + b3) * 100.0


if __name__ == "__main__":
    key = jax.random.PRNGKey(0)
    k_x, k_x2, k_p = jax.random.split(key, 3)

    batch, input_size = 8, 20  # NOTE: training-mode BN requires batch > 1
    x = jax.random.normal(k_x, (batch, input_size), jnp.float32)
    params = init_params(k_p, input_size)

    # Small batch: single-tile path.
    out = sleep_score_forward(x, params)
    out = jax.block_until_ready(out)
    ref = reference_forward(x, params)
    assert out.shape == (batch, 1)
    assert jnp.allclose(out, ref, atol=1e-3, rtol=1e-3), (out, ref)

    # Multi-tile path (small tile_b to exercise grid, cross-tile stats, masking).
    batch2 = 300
    x2 = jax.random.normal(k_x2, (batch2, input_size), jnp.float32)
    out2 = sleep_score_forward(x2, params, tile_b=128)
    out2 = jax.block_until_ready(out2)
    ref2 = reference_forward(x2, params)
    assert out2.shape == (batch2, 1)
    assert jnp.allclose(out2, ref2, atol=1e-3, rtol=1e-3), (out2, ref2)

    print("KERNEL_OK")
</pallas_src>

<mosaic_0001>
module attributes {stable_mosaic.version = 11 : i64} {
  func.func @kernel(%arg0: i32, %arg1: i32, %arg2: memref<8x20xf32, #tpu.memory_space<vmem>>, %arg3: memref<20x64xf32, #tpu.memory_space<vmem>>, %arg4: memref<64x32xf32, #tpu.memory_space<vmem>>, %arg5: memref<8x128xf32, #tpu.memory_space<vmem>>, %arg6: memref<1x8xf32, #tpu.memory_space<vmem>>, %arg7: memref<8x128xf32, #tpu.memory_space<vmem>>) attributes {dimension_semantics = [#tpu.dimension_semantics<arbitrary>, #tpu.dimension_semantics<arbitrary>], iteration_bounds = array<i64: 3, 1>, scalar_prefetch = 0 : i64, scratch_operands = 1 : i64, tpu.core_type = #tpu.core_type<tc>, window_params = [{transform_indices = @transform_0, window_bounds = array<i64: 8, 20>}, {pipeline_mode = #tpu.pipeline_mode<synchronous>, transform_indices = @transform_1, window_bounds = array<i64: 20, 64>}, {pipeline_mode = #tpu.pipeline_mode<synchronous>, transform_indices = @transform_2, window_bounds = array<i64: 64, 32>}, {pipeline_mode = #tpu.pipeline_mode<synchronous>, transform_indices = @transform_3, window_bounds = array<i64: 8, 128>}, {transform_indices = @transform_4, window_bounds = array<i64: 1, 8>}]} {
    %c0_i32 = arith.constant 0 : i32
    %0 = arith.cmpi eq, %arg0, %c0_i32 : i32
    %c0_i32_0 = arith.constant 0 : i32
    %1 = arith.cmpi eq, %arg1, %c0_i32_0 : i32
    %2 = arith.andi %0, %1 : i1
    %3 = arith.extui %2 : i1 to i32
    %c0_i32_1 = arith.constant 0 : i32
    %4 = arith.cmpi ne, %3, %c0_i32_1 : i32
    scf.if %4 {
      %cst_15 = arith.constant 0.000000e+00 : f32
      %27 = vector.broadcast %cst_15 : f32 to vector<8x128xf32>
      %c0_16 = arith.constant 0 : index
      %c0_17 = arith.constant 0 : index
      %28 = vector.load %arg7[%c0_16, %c0_17] : memref<8x128xf32, #tpu.memory_space<vmem>>, vector<8x128xf32>
      tpu.vector_store %arg7[%c0_16, %c0_17], %27 {strides = array<i32>} : memref<8x128xf32, #tpu.memory_space<vmem>>, vector<8x128xf32>,
    } else {
    }
    %c1_i32 = arith.constant 1 : i32
    %5 = arith.cmpi eq, %arg0, %c1_i32 : i32
    %c0_i32_2 = arith.constant 0 : i32
    %6 = arith.cmpi eq, %arg1, %c0_i32_2 : i32
    %7 = arith.andi %5, %6 : i1
    %8 = arith.extui %7 : i1 to i32
    %c0_i32_3 = arith.constant 0 : i32
    %9 = arith.cmpi ne, %8, %c0_i32_3 : i32
    scf.if %9 {
      %c0_15 = arith.constant 0 : index
      %c0_16 = arith.constant 0 : index
      %27 = vector.load %arg5[%c0_15, %c0_16] : memref<8x128xf32, #tpu.memory_space<vmem>>, vector<1x64xf32>
      %c1 = arith.constant 1 : index
      %c0_17 = arith.constant 0 : index
      %28 = vector.load %arg5[%c1, %c0_17] : memref<8x128xf32, #tpu.memory_space<vmem>>, vector<1x64xf32>
      %c0_18 = arith.constant 0 : index
      %c0_19 = arith.constant 0 : index
      %29 = vector.load %arg7[%c0_18, %c0_19] : memref<8x128xf32, #tpu.memory_space<vmem>>, vector<1x64xf32>
      %cst_20 = arith.constant 1.250000e-01 : f32
      %30 = vector.broadcast %cst_20 : f32 to vector<1x64xf32>
      %31 = arith.mulf %29, %30 : vector<1x64xf32>
      %c1_21 = arith.constant 1 : index
      %c0_22 = arith.constant 0 : index
      %32 = vector.load %arg7[%c1_21, %c0_22] : memref<8x128xf32, #tpu.memory_space<vmem>>, vector<1x64xf32>
      %cst_23 = arith.constant 1.250000e-01 : f32
      %33 = vector.broadcast %cst_23 : f32 to vector<1x64xf32>
      %34 = arith.mulf %32, %33 : vector<1x64xf32>
      %35 = arith.mulf %31, %31 : vector<1x64xf32>
      %36 = arith.subf %34, %35 : vector<1x64xf32>
      %cst_24 = arith.constant 9.99999974E-6 : f32
      %37 = vector.broadcast %cst_24 : f32 to vector<1x64xf32>
      %38 = arith.addf %36, %37 : vector<1x64xf32>
      %39 = math.rsqrt %38 : vector<1x64xf32>
      %40 = arith.mulf %39, %27 : vector<1x64xf32>
      %c4 = arith.constant 4 : index
      %c0_25 = arith.constant 0 : index
      %41 = vector.load %arg7[%c4, %c0_25] : memref<8x128xf32, #tpu.memory_space<vmem>>, vector<1x64xf32>
      tpu.vector_store %arg7[%c4, %c0_25], %40 {strides = array<i32>} : memref<8x128xf32, #tpu.memory_space<vmem>>, vector<1x64xf32>,
      %42 = arith.mulf %31, %40 : vector<1x64xf32>
      %43 = arith.subf %28, %42 : vector<1x64xf32>
      %c5 = arith.constant 5 : index
      %c0_26 = arith.constant 0 : index
      %44 = vector.load %arg7[%c5, %c0_26] : memref<8x128xf32, #tpu.memory_space<vmem>>, vector<1x64xf32>
      tpu.vector_store %arg7[%c5, %c0_26], %43 {strides = array<i32>} : memref<8x128xf32, #tpu.memory_space<vmem>>, vector<1x64xf32>,
    } else {
    }
    %c2_i32 = arith.constant 2 : i32
    %10 = arith.cmpi eq, %arg0, %c2_i32 : i32
    %c0_i32_4 = arith.constant 0 : i32
    %11 = arith.cmpi eq, %arg1, %c0_i32_4 : i32
    %12 = arith.andi %10, %11 : i1
    %13 = arith.extui %12 : i1 to i32
    %c0_i32_5 = arith.constant 0 : i32
    %14 = arith.cmpi ne, %13, %c0_i32_5 : i32
    scf.if %14 {
      %c2 = arith.constant 2 : index
      %c0_15 = arith.constant 0 : index
      %27 = vector.load %arg5[%c2, %c0_15] : memref<8x128xf32, #tpu.memory_space<vmem>>, vector<1x32xf32>
      %c3 = arith.constant 3 : index
      %c0_16 = arith.constant 0 : index
      %28 = vector.load %arg5[%c3, %c0_16] : memref<8x128xf32, #tpu.memory_space<vmem>>, vector<1x32xf32>
      %c2_17 = arith.constant 2 : index
      %c0_18 = arith.constant 0 : index
      %29 = vector.load %arg7[%c2_17, %c0_18] : memref<8x128xf32, #tpu.memory_space<vmem>>, vector<1x32xf32>
      %cst_19 = arith.constant 1.250000e-01 : f32
      %30 = vector.broadcast %cst_19 : f32 to vector<1x32xf32>
      %31 = arith.mulf %29, %30 : vector<1x32xf32>
      %c3_20 = arith.constant 3 : index
      %c0_21 = arith.constant 0 : index
      %32 = vector.load %arg7[%c3_20, %c0_21] : memref<8x128xf32, #tpu.memory_space<vmem>>, vector<1x32xf32>
      %cst_22 = arith.constant 1.250000e-01 : f32
      %33 = vector.broadcast %cst_22 : f32 to vector<1x32xf32>
      %34 = arith.mulf %32, %33 : vector<1x32xf32>
      %35 = arith.mulf %31, %31 : vector<1x32xf32>
      %36 = arith.subf %34, %35 : vector<1x32xf32>
      %cst_23 = arith.constant 9.99999974E-6 : f32
      %37 = vector.broadcast %cst_23 : f32 to vector<1x32xf32>
      %38 = arith.addf %36, %37 : vector<1x32xf32>
      %39 = math.rsqrt %38 : vector<1x32xf32>
      %40 = arith.mulf %39, %27 : vector<1x32xf32>
      %c6 = arith.constant 6 : index
      %c0_24 = arith.constant 0 : index
      %41 = vector.load %arg7[%c6, %c0_24] : memref<8x128xf32, #tpu.memory_space<vmem>>, vector<1x32xf32>
      tpu.vector_store %arg7[%c6, %c0_24], %40 {strides = array<i32>} : memref<8x128xf32, #tpu.memory_space<vmem>>, vector<1x32xf32>,
      %42 = arith.mulf %31, %40 : vector<1x32xf32>
      %43 = arith.subf %28, %42 : vector<1x32xf32>
      %c7 = arith.constant 7 : index
      %c0_25 = arith.constant 0 : index
      %44 = vector.load %arg7[%c7, %c0_25] : memref<8x128xf32, #tpu.memory_space<vmem>>, vector<1x32xf32>
      tpu.vector_store %arg7[%c7, %c0_25], %43 {strides = array<i32>} : memref<8x128xf32, #tpu.memory_space<vmem>>, vector<1x32xf32>,
    } else {
    }
    %c0 = arith.constant 0 : index
    %c0_6 = arith.constant 0 : index
    %15 = vector.load %arg2[%c0, %c0_6] : memref<8x20xf32, #tpu.memory_space<vmem>>, vector<8x20xf32>
    %c0_7 = arith.constant 0 : index
    %c0_8 = arith.constant 0 : index
    %16 = vector.load %arg3[%c0_7, %c0_8] : memref<20x64xf32, #tpu.memory_space<vmem>>, vector<20x64xf32>
    %cst = arith.constant dense<0.000000e+00> : vector<8x64xf32>
    %17 = tpu.matmul %15, %16, %cst {dimension_numbers = #tpu.dot_dimension_numbers<[1], [0], [0], [1], [0, 0, 1, 1], [], []>} : vector<8x20xf32>, vector<20x64xf32>, vector<8x64xf32> -> vector<8x64xf32>
    %c0_i32_9 = arith.constant 0 : i32
    %18 = arith.cmpi eq, %arg0, %c0_i32_9 : i32
    %19 = arith.extui %18 : i1 to i32
    %c0_i32_10 = arith.constant 0 : i32
    %20 = arith.cmpi ne, %19, %c0_i32_10 : i32
    scf.if %20 {
      %c0_15 = arith.constant 0 : index
      %c0_16 = arith.constant 0 : index
      %27 = vector.load %arg7[%c0_15, %c0_16] : memref<8x128xf32, #tpu.memory_space<vmem>>, vector<1x64xf32>
      %cst_17 = arith.constant dense<0.000000e+00> : vector<64xf32>
      %28 = vector.multi_reduction <add>, %17, %cst_17 [0] : vector<8x64xf32> to vector<64xf32>
      %29 = vector.shape_cast %28 : vector<64xf32> to vector<1x64xf32>
      %30 = arith.addf %27, %29 : vector<1x64xf32>
      %c0_18 = arith.constant 0 : index
      %c0_19 = arith.constant 0 : index
      %31 = vector.load %arg7[%c0_18, %c0_19] : memref<8x128xf32, #tpu.memory_space<vmem>>, vector<1x64xf32>
      tpu.vector_store %arg7[%c0_18, %c0_19], %30 {strides = array<i32>} : memref<8x128xf32, #tpu.memory_space<vmem>>, vector<1x64xf32>,
      %c1 = arith.constant 1 : index
      %c0_20 = arith.constant 0 : index
      %32 = vector.load %arg7[%c1, %c0_20] : memref<8x128xf32, #tpu.memory_space<vmem>>, vector<1x64xf32>
      %33 = arith.mulf %17, %17 : vector<8x64xf32>
      %cst_21 = arith.constant dense<0.000000e+00> : vector<64xf32>
      %34 = vector.multi_reduction <add>, %33, %cst_21 [0] : vector<8x64xf32> to vector<64xf32>
      %35 = vector.shape_cast %34 : vector<64xf32> to vector<1x64xf32>
      %36 = arith.addf %32, %35 : vector<1x64xf32>
      %c1_22 = arith.constant 1 : index
      %c0_23 = arith.constant 0 : index
      %37 = vector.load %arg7[%c1_22, %c0_23] : memref<8x128xf32, #tpu.memory_space<vmem>>, vector<1x64xf32>
      tpu.vector_store %arg7[%c1_22, %c0_23], %36 {strides = array<i32>} : memref<8x128xf32, #tpu.memory_space<vmem>>, vector<1x64xf32>,
    } else {
    }
    %c1_i32_11 = arith.constant 1 : i32
    %21 = arith.cmpi eq, %arg0, %c1_i32_11 : i32
    %22 = arith.extui %21 : i1 to i32
    %c0_i32_12 = arith.constant 0 : i32
    %23 = arith.cmpi ne, %22, %c0_i32_12 : i32
    scf.if %23 {
      %c4 = arith.constant 4 : index
      %c0_15 = arith.constant 0 : index
      %27 = vector.load %arg7[%c4, %c0_15] : memref<8x128xf32, #tpu.memory_space<vmem>>, vector<1x64xf32>
      %28 = vector.broadcast %27 : vector<1x64xf32> to vector<8x64xf32>
      %29 = arith.mulf %17, %28 : vector<8x64xf32>
      %c5 = arith.constant 5 : index
      %c0_16 = arith.constant 0 : index
      %30 = vector.load %arg7[%c5, %c0_16] : memref<8x128xf32, #tpu.memory_space<vmem>>, vector<1x64xf32>
      %31 = vector.broadcast %30 : vector<1x64xf32> to vector<8x64xf32>
      %32 = arith.addf %29, %31 : vector<8x64xf32>
      %cst_17 = arith.constant 0.000000e+00 : f32
      %33 = vector.broadcast %cst_17 : f32 to vector<8x64xf32>
      %34 = arith.maximumf %32, %33 : vector<8x64xf32>
      %c0_18 = arith.constant 0 : index
      %c0_19 = arith.constant 0 : index
      %35 = vector.load %arg4[%c0_18, %c0_19] : memref<64x32xf32, #tpu.memory_space<vmem>>, vector<64x32xf32>
      %cst_20 = arith.constant dense<0.000000e+00> : vector<8x32xf32>
      %36 = tpu.matmul %34, %35, %cst_20 {dimension_numbers = #tpu.dot_dimension_numbers<[1], [0], [0], [1], [0, 0, 1, 1], [], []>} : vector<8x64xf32>, vector<64x32xf32>, vector<8x32xf32> -> vector<8x32xf32>
      %c2 = arith.constant 2 : index
      %c0_21 = arith.constant 0 : index
      %37 = vector.load %arg7[%c2, %c0_21] : memref<8x128xf32, #tpu.memory_space<vmem>>, vector<1x32xf32>
      %cst_22 = arith.constant dense<0.000000e+00> : vector<32xf32>
      %38 = vector.multi_reduction <add>, %36, %cst_22 [0] : vector<8x32xf32> to vector<32xf32>
      %39 = vector.shape_cast %38 : vector<32xf32> to vector<1x32xf32>
      %40 = arith.addf %37, %39 : vector<1x32xf32>
      %c2_23 = arith.constant 2 : index
      %c0_24 = arith.constant 0 : index
      %41 = vector.load %arg7[%c2_23, %c0_24] : memref<8x128xf32, #tpu.memory_space<vmem>>, vector<1x32xf32>
      tpu.vector_store %arg7[%c2_23, %c0_24], %40 {strides = array<i32>} : memref<8x128xf32, #tpu.memory_space<vmem>>, vector<1x32xf32>,
      %c3 = arith.constant 3 : index
      %c0_25 = arith.constant 0 : index
      %42 = vector.load %arg7[%c3, %c0_25] : memref<8x128xf32, #tpu.memory_space<vmem>>, vector<1x32xf32>
      %43 = arith.mulf %36, %36 : vector<8x32xf32>
      %cst_26 = arith.constant dense<0.000000e+00> : vector<32xf32>
      %44 = vector.multi_reduction <add>, %43, %cst_26 [0] : vector<8x32xf32> to vector<32xf32>
      %45 = vector.shape_cast %44 : vector<32xf32> to vector<1x32xf32>
      %46 = arith.addf %42, %45 : vector<1x32xf32>
      %c3_27 = arith.constant 3 : index
      %c0_28 = arith.constant 0 : index
      %47 = vector.load %arg7[%c3_27, %c0_28] : memref<8x128xf32, #tpu.memory_space<vmem>>, vector<1x32xf32>
      tpu.vector_store %arg7[%c3_27, %c0_28], %46 {strides = array<i32>} : memref<8x128xf32, #tpu.memory_space<vmem>>, vector<1x32xf32>,
    } else {
    }
    %c2_i32_13 = arith.constant 2 : i32
    %24 = arith.cmpi eq, %arg0, %c2_i32_13 : i32
    %25 = arith.extui %24 : i1 to i32
    %c0_i32_14 = arith.constant 0 : i32
    %26 = arith.cmpi ne, %25, %c0_i32_14 : i32
    scf.if %26 {
      %c4 = arith.constant 4 : index
      %c0_15 = arith.constant 0 : index
      %27 = vector.load %arg7[%c4, %c0_15] : memref<8x128xf32, #tpu.memory_space<vmem>>, vector<1x64xf32>
      %28 = vector.broadcast %27 : vector<1x64xf32> to vector<8x64xf32>
      %29 = arith.mulf %17, %28 : vector<8x64xf32>
      %c5 = arith.constant 5 : index
      %c0_16 = arith.constant 0 : index
      %30 = vector.load %arg7[%c5, %c0_16] : memref<8x128xf32, #tpu.memory_space<vmem>>, vector<1x64xf32>
      %31 = vector.broadcast %30 : vector<1x64xf32> to vector<8x64xf32>
      %32 = arith.addf %29, %31 : vector<8x64xf32>
      %cst_17 = arith.constant 0.000000e+00 : f32
      %33 = vector.broadcast %cst_17 : f32 to vector<8x64xf32>
      %34 = arith.maximumf %32, %33 : vector<8x64xf32>
      %c0_18 = arith.constant 0 : index
      %c0_19 = arith.constant 0 : index
      %35 = vector.load %arg4[%c0_18, %c0_19] : memref<64x32xf32, #tpu.memory_space<vmem>>, vector<64x32xf32>
      %cst_20 = arith.constant dense<0.000000e+00> : vector<8x32xf32>
      %36 = tpu.matmul %34, %35, %cst_20 {dimension_numbers = #tpu.dot_dimension_numbers<[1], [0], [0], [1], [0, 0, 1, 1], [], []>} : vector<8x64xf32>, vector<64x32xf32>, vector<8x32xf32> -> vector<8x32xf32>
      %c6 = arith.constant 6 : index
      %c0_21 = arith.constant 0 : index
      %37 = vector.load %arg7[%c6, %c0_21] : memref<8x128xf32, #tpu.memory_space<vmem>>, vector<1x32xf32>
      %38 = vector.broadcast %37 : vector<1x32xf32> to vector<8x32xf32>
      %39 = arith.mulf %36, %38 : vector<8x32xf32>
      %c7 = arith.constant 7 : index
      %c0_22 = arith.constant 0 : index
      %40 = vector.load %arg7[%c7, %c0_22] : memref<8x128xf32, #tpu.memory_space<vmem>>, vector<1x32xf32>
      %41 = vector.broadcast %40 : vector<1x32xf32> to vector<8x32xf32>
      %42 = arith.addf %39, %41 : vector<8x32xf32>
      %cst_23 = arith.constant 0.000000e+00 : f32
      %43 = vector.broadcast %cst_23 : f32 to vector<8x32xf32>
      %44 = arith.maximumf %42, %43 : vector<8x32xf32>
      %c4_24 = arith.constant 4 : index
      %c0_25 = arith.constant 0 : index
      %45 = vector.load %arg5[%c4_24, %c0_25] : memref<8x128xf32, #tpu.memory_space<vmem>>, vector<1x32xf32>
      %c5_26 = arith.constant 5 : index
      %c0_27 = arith.constant 0 : index
      %46 = vector.load %arg5[%c5_26, %c0_27] : memref<8x128xf32, #tpu.memory_space<vmem>>, vector<1x1xf32>
      %cst_28 = arith.constant dense<0.000000e+00> : vector<1x8xf32>
      %47 = tpu.matmul %45, %44, %cst_28 {dimension_numbers = #tpu.dot_dimension_numbers<[1], [1], [0], [0], [0, 0, 1, 0], [], []>} : vector<1x32xf32>, vector<8x32xf32>, vector<1x8xf32> -> vector<1x8xf32>
      %48 = vector.broadcast %46 : vector<1x1xf32> to vector<1x8xf32>
      %49 = arith.addf %47, %48 : vector<1x8xf32>
      %50 = arith.negf %49 : vector<1x8xf32>
      %51 = math.exp %50 : vector<1x8xf32>
      %cst_29 = arith.constant 1.000000e+00 : f32
      %52 = vector.broadcast %cst_29 : f32 to vector<1x8xf32>
      %53 = arith.addf %52, %51 : vector<1x8xf32>
      %54 = arith.divf %52, %53 : vector<1x8xf32>
      %cst_30 = arith.constant 1.000000e+02 : f32
      %55 = vector.broadcast %cst_30 : f32 to vector<1x8xf32>
      %56 = arith.mulf %54, %55 : vector<1x8xf32>
      %c0_31 = arith.constant 0 : index
      %c0_32 = arith.constant 0 : index
      %57 = vector.load %arg6[%c0_31, %c0_32] : memref<1x8xf32, #tpu.memory_space<vmem>>, vector<1x8xf32>
      tpu.vector_store %arg6[%c0_31, %c0_32], %56 {strides = array<i32>} : memref<1x8xf32, #tpu.memory_space<vmem>>, vector<1x8xf32>,
    } else {
    }
    return
  }
  func.func @transform_0(%arg0: i32, %arg1: i32) -> (i32, i32) {
    %c0_i32 = arith.constant 0 : i32
    %c0_i32_0 = arith.constant 0 : i32
    return %arg1, %c0_i32 : i32, i32
  }
  func.func @transform_1(%arg0: i32, %arg1: i32) -> (i32, i32) {
    %c0_i32 = arith.constant 0 : i32
    %c0_i32_0 = arith.constant 0 : i32
    %c0_i32_1 = arith.constant 0 : i32
    return %c0_i32, %c0_i32_0 : i32, i32
  }
  func.func @transform_2(%arg0: i32, %arg1: i32) -> (i32, i32) {
    %c0_i32 = arith.constant 0 : i32
    %c0_i32_0 = arith.constant 0 : i32
    %c0_i32_1 = arith.constant 0 : i32
    return %c0_i32, %c0_i32_0 : i32, i32
  }
  func.func @transform_3(%arg0: i32, %arg1: i32) -> (i32, i32) {
    %c0_i32 = arith.constant 0 : i32
    %c0_i32_0 = arith.constant 0 : i32
    %c0_i32_1 = arith.constant 0 : i32
    return %c0_i32, %c0_i32_0 : i32, i32
  }
  func.func @transform_4(%arg0: i32, %arg1: i32) -> (i32, i32) {
    %c0_i32 = arith.constant 0 : i32
    %c0_i32_0 = arith.constant 0 : i32
    return %c0_i32, %arg1 : i32, i32
  }
}

</mosaic_0001>

<bundles_post_ra>
// kernel: tpu_custom_call.1
= control target key start
LH: loop header
LB: loop body
LE: loop exit
PB: predicated region body
PF: predicated region fallthrough
CT: control target
= control target key end

     0   :  { %9 = vsyncpa [#allocation4], 0  ;;  %s982_s15 = smov 0   ;;  %s984_s16 = smov 0   ;;  %s1120_s0 = inlined_call_operand.vmem [shape: f32[8,20], index: 0, kind: input, shape index: {}]   ;;  %s1121_s1 = inlined_call_operand.vmem [shape: f32[20,64], index: 1, kind: input, shape index: {}]   ;;  %s1122_s2 = inlined_call_operand.vmem [shape: f32[64,32], index: 2, kind: input, shape index: {}]   ;;  %s1123_s3 = inlined_call_operand.vmem [shape: f32[8,128], index: 3, kind: input, shape index: {}]   ;;  %s1124_s4 = inlined_call_operand.hbm [shape: f32[1,8], index: 4, kind: output, shape index: {}]  }
   0x1   :  { %s986_s17 = smov 0  }
   0x2 LB: > { %s742_s18 = sadd.s32 4294967295, %s946_s17   ;;  %s27_s19 = sadd.s32 1, %s942_s16  ;;  %s946_s17 = sphi %s986_s17, %s15_s17   ;;  %s942_s16 = sphi %s984_s16, %s1127_s16   ;;  %s938_s15 = sphi %s982_s15, %s1126_s15  }
   0x3   : > { %p29_p0 = scmp.ge.s32.totalorder %s27_s19, 3  ;;  %p745_p1 = scmp.ge.s32.totalorder %s946_s17, 1 }
   0x4   : > { %p174_p2 = scmp.lt.s32.totalorder %s946_s17, 4 }
   0x5   : > { %s1129_s19 = smov (%p29_p0, %s27_s19), 0 }
   0x6   : > { %p175_p3 = pnand %p745_p1, %p174_p2 }
   0x7   : > { %p198_p4 = scmp.eq.s32.totalorder (!%p175_p3), %s938_s15, 0 }
   0x8   : > { %178 = sbr.rel (%p175_p3) target bundleno = 1008 (0x3f0), region = 36 }
   0xd   : > { %203 = sbr.rel (!%p198_p4) target bundleno = 18 (0x12), region = 40  ;;  %v948_v0 = vmov (%p198_p4), 0.0  }
   0xe   : > { %204 = vst [vmem:[#allocation2] sm:$0xff] (%p198_p4), %v948_v0 }
  0x12 PF: > { %p205_p5 = scmp.eq.s32.totalorder %s938_s15, 1 }
  0x13   : > { %v210_v8 = vld [vmem:[%s1123_s3] sm:$0x1] (%p205_p5)  ;;  %vm221_vm0 = vcmask (%p205_p5), 516096   ;;  %v211_v11 = vld [vmem:[%s1123_s3 + $0x1] sm:$0x1] (%p205_p5) }
  0x14   : > { %209 = sbr.rel (!%p205_p5) target bundleno = 51 (0x33), region = 44 }
  0x15   : > { %v212_v1 = vld [vmem:[#allocation2] sm:$0x1] (%p205_p5)  ;;  %v214_v2 = vld [vmem:[#allocation2 + $0x1] sm:$0x1] (%p205_p5) }
  0x16   : > { %v213_v3 = vmul.f32 (%p205_p5), 0.125, %v212_v1  ;;  %v215_v4 = vmul.f32 (%p205_p5), 0.125, %v214_v2 }
  0x18   : > { %v216_v5 = vmul.f32 (%p205_p5), %v213_v3, %v213_v3 }
  0x1a   : > { %v217_v6 = vsub.f32 %v215_v4, %v216_v5 }
  0x1c   : > { %v218_v7 = vadd.f32 1e-05, %v217_v6 }
  0x1e   : > { %887 = vrsqrt.f32 %v218_v7 }
  0x2b   : > { %v888_v9 = vpop.eup %887 }
  0x2c   : > { %v220_v10 = vmul.f32 %v888_v9, %v210_v8 }
  0x2e   : > { %222 = vst.msk [vmem:[#allocation2 + $0x4] sm:$0x1] %vm221_vm0, %v220_v10  ;;  %v223_v12 = vmul.f32 %v220_v10, %v213_v3 }
  0x30   : > { %v224_v13 = vsub.f32 %v211_v11, %v223_v12 }
  0x32   : > { %225 = vst.msk [vmem:[#allocation2 + $0x5] sm:$0x1] %vm221_vm0, %v224_v13 }
  0x33 PF: > { %p226_p6 = scmp.eq.s32.totalorder %s938_s15, 2 }
  0x34   : > { %v233_v14 = vld [vmem:[#allocation2 + $0x2] sm:$0x1] (%p226_p6)  ;;  %v235_v15 = vld [vmem:[#allocation2 + $0x3] sm:$0x1] (%p226_p6)  ;;  %vm242_vm1 = vcmask (%p226_p6), 253952  }
  0x35   : > { %230 = sbr.rel (!%p226_p6) target bundleno = 82 (0x52), region = 48  ;;  %v234_v16 = vmul.f32 (%p226_p6), 0.125, %v233_v14  ;;  %v236_v17 = vmul.f32 (%p226_p6), 0.125, %v235_v15  ;;  %v231_v21 = vld [vmem:[%s1123_s3 + $0x2] sm:$0x1] (%p226_p6) }
  0x36   : > { %v232_v24 = vld [vmem:[%s1123_s3 + $0x3] sm:$0x1] (%p226_p6) }
  0x37   : > { %v237_v18 = vmul.f32 (%p226_p6), %v234_v16, %v234_v16 }
  0x39   : > { %v238_v19 = vsub.f32 (%p226_p6), %v236_v17, %v237_v18 }
  0x3b   : > { %v239_v20 = vadd.f32 1e-05, %v238_v19 }
  0x3d   : > { %889 = vrsqrt.f32 %v239_v20 }
  0x4a   : > { %v890_v22 = vpop.eup %889 }
  0x4b   : > { %v241_v23 = vmul.f32 %v890_v22, %v231_v21 }
  0x4d   : > { %243 = vst.msk [vmem:[#allocation2 + $0x6] sm:$0x1] %vm242_vm1, %v241_v23  ;;  %v244_v25 = vmul.f32 %v241_v23, %v234_v16 }
  0x4f   : > { %v245_v26 = vsub.f32 %v232_v24, %v244_v25 }
  0x51   : > { %246 = vst.msk [vmem:[#allocation2 + $0x7] sm:$0x1] %vm242_vm1, %v245_v26 }
  0x52 PF: > { %v250_v27 = vld [vmem:[%s1121_s1 + $0x10] sm:$0xf]  ;;  %vm255_vm2 = vcmask 1043456   ;;  %v949_v28 = vmov 0.0   ;;  %v249_v29 = vld [vmem:[%s1121_s1 + $0x8] sm:$0xff]  ;;  %vm950_vm3 = vmmov 0  }
  0x53   : > { %796 = vmatprep.subr.mxu0 %v949_v28  ;;  %802 = vmatprep.mubr.msk.f32.mxu0 %vm950_vm3, %v949_v28  ;;  %v248_v30 = vld [vmem:[%s1121_s1] sm:$0xff]  ;;  %vm251_vm4 = vcmask 162816   ;;  %p751_p7 = scmp.ne.s32.totalorder %s938_s15, 0 }
  0x54   : > { %797 = vmatpush3.msk.msra.mxu0 %vm255_vm2, %v250_v27  ;;  %v247_v31 = vld [vmem:[%s1120_s0] sm:$0xff] }
  0x55   : > { %798 = vmatprep.subr.mxu0 %v949_v28 }
  0x56   : > { %799 = vmatpush3.msra.mxu0 %v249_v29 }
  0x57   : > { %800 = vmatprep.subr.mxu0 %v949_v28 }
  0x58   : > { %801 = vmatpush3.msra.mxu0 %v248_v30 }
  0x59   : > { %803 = vmatmul.mubr.msk.f32.vlgmr.msra.gmra.mxu0 %vm251_vm4, %v247_v31 }
 0x117   : > { %331 = sbr.rel (%p751_p7) target bundleno = 302 (0x12e), region = 52 }
 0x119   : > { %v1030_v32 = vpop.f32.mrf.mxu0 }
 0x11b   : > { %v804_v33 = vpop.f32.mrf.mxu0 }
 0x11c   : > { %vm333_vm5 = vcmask 523264   ;;  %v345_v34 = vmul.f32 %v1030_v32, %v1030_v32  ;;  %v332_v46 = vld [vmem:[#allocation2] sm:$0x1]  ;;  %v344_v49 = vld [vmem:[#allocation2 + $0x1] sm:$0x1]  ;;  %vm342_vm6 = vcmask 516096  }
 0x11d   : > { %v334_v35 = vsel %vm333_vm5, %v1030_v32, 0.0 }
 0x11e   : > { %v335_v36 = vrot.slane %v334_v35, 4  ;;  %v346_v37 = vsel %vm333_vm5, %v345_v34, 0.0 }
 0x11f   : > { %v347_v38 = vrot.slane %v346_v37, 4 }
 0x120   : > { %v336_v39 = vadd.f32 %v335_v36, %v334_v35 }
 0x121   : > { %v348_v40 = vadd.f32 %v347_v38, %v346_v37 }
 0x122   : > { %v337_v41 = vrot.slane %v336_v39, 2 }
 0x123   : > { %v349_v42 = vrot.slane %v348_v40, 2 }
 0x124   : > { %v338_v43 = vadd.f32 %v337_v41, %v336_v39 }
 0x125   : > { %v350_v44 = vadd.f32 %v349_v42, %v348_v40 }
 0x126   : > { %v339_v45 = vrot.slane %v338_v43, 1 }
 0x127   : > { %v351_v47 = vrot.slane %v350_v44, 1 }
 0x128   : > { %v340_v48 = vadd.f32 %v339_v45, %v338_v43 }
 0x129   : > { %v352_v50 = vadd.f32 %v351_v47, %v350_v44 }
 0x12a   : > { %v341_v51 = vadd.f32 %v340_v48, %v332_v46 }
 0x12b   : > { %v353_v52 = vadd.f32 %v352_v50, %v344_v49 }
 0x12c   : > { %343 = vst.msk [vmem:[#allocation2] sm:$0x1] %vm342_vm6, %v341_v51 }
 0x12d   : > { %354 = vst.msk [vmem:[#allocation2 + $0x1] sm:$0x1] %vm342_vm6, %v353_v52 }
 0x12e PF: > { %p752_p8 = scmp.ne.s32.totalorder %s938_s15, 1 }
 0x130   : > { %357 = sbr.rel (%p752_p8) target bundleno = 537 (0x219), region = 56 }
 0x135   : > { %v378_v53 = vld [vmem:[%s1122_s2 + $0x38] sm:$0xff]  ;;  %v951_v54 = vmov 0.0   ;;  %v377_v55 = vld [vmem:[%s1122_s2 + $0x30] sm:$0xff]  ;;  %vm952_vm7 = vmmov 0   ;;  %v753_v56 = vld [vmem:[#allocation2 + $0x4] ss:$0 sm:$0xff] }
 0x136   : > { %805 = vmatprep.subr.mxu0 %v951_v54  ;;  %821 = vmatprep.mubr.msk.f32.mxu0 %vm952_vm7, %v951_v54  ;;  %v376_v57 = vld [vmem:[%s1122_s2 + $0x28] sm:$0xff]  ;;  %v375_v58 = vld [vmem:[%s1122_s2 + $0x20] sm:$0xff]  ;;  %v363_v59 = vmul.f32 %v753_v56, %v1030_v32  ;;  %v374_v61 = vld [vmem:[%s1122_s2 + $0x18] sm:$0xff]  ;;  %vm379_vm8 = vcmask 523264   ;;  %vm454_vm9 = vcmask 261120   ;;  %vm463_vm10 = vcmask 253952  }
 0x137   : > { %806 = vmatpush3.msra.mxu0 %v378_v53  ;;  %v754_v60 = vld [vmem:[#allocation2 + $0x5] ss:$0 sm:$0xff]  ;;  %v373_v62 = vld [vmem:[%s1122_s2 + $0x10] sm:$0xff]  ;;  %v372_v0 = vld [vmem:[%s1122_s2 + $0x8] sm:$0xff] }
 0x138   : > { %807 = vmatprep.subr.mxu0 %v951_v54  ;;  %v369_v63 = vadd.f32 %v754_v60, %v363_v59  ;;  %v371_v1 = vld [vmem:[%s1122_s2] sm:$0xff] }
 0x139   : > { %808 = vmatpush3.msra.mxu0 %v377_v55  ;;  %v453_v17 = vld [vmem:[#allocation2 + $0x2] sm:$0x1]  ;;  %v465_v20 = vld [vmem:[#allocation2 + $0x3] sm:$0x1] }
 0x13a   : > { %809 = vmatprep.subr.mxu0 %v951_v54  ;;  %v370_v2 = vmax.f32 %v369_v63, 0.0 }
 0x13b   : > { %810 = vmatpush3.msra.mxu0 %v376_v57 }
 0x13c   : > { %811 = vmatprep.subr.mxu0 %v951_v54 }
 0x13d   : > { %812 = vmatpush3.msra.mxu0 %v375_v58 }
 0x13e   : > { %813 = vmatprep.subr.mxu0 %v951_v54 }
 0x13f   : > { %814 = vmatpush3.msra.mxu0 %v374_v61 }
 0x140   : > { %815 = vmatprep.subr.mxu0 %v951_v54 }
 0x141   : > { %816 = vmatpush3.msra.mxu0 %v373_v62 }
 0x142   : > { %817 = vmatprep.subr.mxu0 %v951_v54 }
 0x143   : > { %818 = vmatpush3.msra.mxu0 %v372_v0 }
 0x144   : > { %819 = vmatprep.subr.mxu0 %v951_v54 }
 0x145   : > { %820 = vmatpush3.msra.mxu0 %v371_v1 }
 0x146   : > { %822 = vmatmul.mubr.msk.f32.vlgmr.msra.gmra.mxu0 %vm379_vm8, %v370_v2 }
 0x206   : > { %v449_v3 = vpop.f32.mrf.mxu0 }
 0x207   : > { %v455_v4 = vsel %vm454_vm9, %v449_v3, 0.0  ;;  %v466_v5 = vmul.f32 %v449_v3, %v449_v3 }
 0x208   : > { %v456_v6 = vrot.slane %v455_v4, 4  ;;  %v823_v7 = vpop.f32.mrf.mxu0 }
 0x209   : > { %v467_v8 = vsel %vm454_vm9, %v466_v5, 0.0 }
 0x20a   : > { %v457_v9 = vadd.f32 %v456_v6, %v455_v4  ;;  %v468_v10 = vrot.slane %v467_v8, 4 }
 0x20c   : > { %v458_v11 = vrot.slane %v457_v9, 2  ;;  %v469_v12 = vadd.f32 %v468_v10, %v467_v8 }
 0x20e   : > { %v459_v13 = vadd.f32 %v458_v11, %v457_v9  ;;  %v470_v14 = vrot.slane %v469_v12, 2 }
 0x210   : > { %v460_v15 = vrot.slane %v459_v13, 1  ;;  %v471_v16 = vadd.f32 %v470_v14, %v469_v12 }
 0x212   : > { %v461_v18 = vadd.f32 %v460_v15, %v459_v13  ;;  %v472_v19 = vrot.slane %v471_v16, 1 }
 0x214   : > { %v462_v21 = vadd.f32 %v461_v18, %v453_v17  ;;  %v473_v22 = vadd.f32 %v472_v19, %v471_v16 }
 0x216   : > { %464 = vst.msk [vmem:[#allocation2 + $0x2] sm:$0x1] %vm463_vm10, %v462_v21  ;;  %v474_v23 = vadd.f32 %v473_v22, %v465_v20 }
 0x218   : > { %475 = vst.msk [vmem:[#allocation2 + $0x3] sm:$0x1] %vm463_vm10, %v474_v23 }
 0x219 PF: > { %p756_p9 = scmp.ne.s32.totalorder %s938_s15, 2 }
 0x21b   : > { %478 = sbr.rel (%p756_p9) target bundleno = 993 (0x3e1), region = 60 }
 0x220   : > { %v499_v24 = vld [vmem:[%s1122_s2 + $0x38] sm:$0xff]  ;;  %v953_v25 = vmov 0.0   ;;  %v498_v26 = vld [vmem:[%s1122_s2 + $0x30] sm:$0xff]  ;;  %vm954_vm11 = vmmov 0   ;;  %v757_v27 = vld [vmem:[#allocation2 + $0x4] ss:$0 sm:$0xff] }
 0x221   : > { %824 = vmatprep.subr.mxu0 %v953_v25  ;;  %840 = vmatprep.mubr.msk.f32.mxu0 %vm954_vm11, %v953_v25  ;;  %v497_v28 = vld [vmem:[%s1122_s2 + $0x28] sm:$0xff]  ;;  %v496_v29 = vld [vmem:[%s1122_s2 + $0x20] sm:$0xff]  ;;  %v484_v30 = vmul.f32 %v757_v27, %v1030_v32  ;;  %v495_v33 = vld [vmem:[%s1122_s2 + $0x18] sm:$0xff]  ;;  %vm500_vm12 = vcmask 523264   ;;  %v955_v39 = vmov 0   ;;  %vm594_vm13 = vcmask 261120  }
 0x222   : > { %825 = vmatpush3.msra.mxu0 %v499_v24  ;;  %843 = vmatprep.subr.mxu1 %v953_v25  ;;  %v758_v31 = vld [vmem:[#allocation2 + $0x5] ss:$0 sm:$0xff]  ;;  %v494_v34 = vld [vmem:[%s1122_s2 + $0x10] sm:$0xff]  ;;  %v493_v32 = vld [vmem:[%s1122_s2 + $0x8] sm:$0xff]  ;;  %vm678_vm14 = vcmask 57344  }
 0x223   : > { %826 = vmatprep.subr.mxu0 %v953_v25  ;;  %845 = vmatprep.mubr.msk.f32.mxu1 %vm954_vm11, %v953_v25  ;;  %v490_v35 = vadd.f32 %v758_v31, %v484_v30  ;;  %v492_v36 = vld [vmem:[%s1122_s2] sm:$0xff] }
 0x224   : > { %827 = vmatpush3.msra.mxu0 %v498_v26  ;;  %v588_v38 = vld [vmem:[%s1123_s3 + $0x5] sm:$0x1]  ;;  %891 = vset.pattern.permute.xlu0 %v955_v39  ;;  %v760_v40 = vld [vmem:[#allocation2 + $0x6] ss:$0 sm:$0xff]  ;;  %v761_v42 = vld [vmem:[#allocation2 + $0x7] ss:$0 sm:$0xff] }
 0x225   : > { %828 = vmatprep.subr.mxu0 %v953_v25  ;;  %v491_v37 = vmax.f32 %v490_v35, 0.0  ;;  %591 = vperm.xlu0 %891, %v588_v38   ;;  %v587_v47 = vld [vmem:[%s1123_s3 + $0x4] sm:$0x1] }
 0x226   : > { %829 = vmatpush3.msra.mxu0 %v497_v28 }
 0x227   : > { %830 = vmatprep.subr.mxu0 %v953_v25 }
 0x228   : > { %831 = vmatpush3.msra.mxu0 %v496_v29 }
 0x229   : > { %832 = vmatprep.subr.mxu0 %v953_v25 }
 0x22a   : > { %833 = vmatpush3.msra.mxu0 %v495_v33 }
 0x22b   : > { %834 = vmatprep.subr.mxu0 %v953_v25 }
 0x22c   : > { %835 = vmatpush3.msra.mxu0 %v494_v34 }
 0x22d   : > { %836 = vmatprep.subr.mxu0 %v953_v25 }
 0x22e   : > { %837 = vmatpush3.msra.mxu0 %v493_v32 }
 0x22f   : > { %838 = vmatprep.subr.mxu0 %v953_v25 }
 0x230   : > { %839 = vmatpush3.msra.mxu0 %v492_v36 }
 0x231   : > { %841 = vmatmul.mubr.msk.f32.vlgmr.msra.gmra.mxu0 %vm500_vm12, %v491_v37 }
 0x2a0   : > { %v592_v48 = vpop.permute.xlu0 %591 }
 0x2f1   : > { %v570_v41 = vpop.f32.mrf.mxu0 }
 0x2f2   : > { %v579_v43 = vmul.f32 %v760_v40, %v570_v41 }
 0x2f3   : > { %v842_v44 = vpop.f32.mrf.mxu0 }
 0x2f4   : > { %v585_v45 = vadd.f32 %v761_v42, %v579_v43 }
 0x2f6   : > { %v586_v46 = vmax.f32 %v585_v45, 0.0 }
 0x2f8   : > { %844 = vmatpush3.xpose.msk.msra.mxu1 %vm594_vm13, %v586_v46 }
 0x2fb   : > { %846 = vmatmul.mubr.msk.f32.vlgmr.msra.gmra.mxu1 %vm594_vm13, %v587_v47 }
 0x3bb   : > { %v667_v49 = vpop.f32.mrf.mxu1 }
 0x3bc   : > { %v668_v50 = vadd.f32 %v667_v49, %v592_v48 }
 0x3bd   : > { %v847_v51 = vpop.f32.mrf.mxu1 }
 0x3be   : > { %v764_v52 = vmul.f32 -1.442695, %v668_v50 }
 0x3c0   : > { %892 = vpow2.f32 %v764_v52 }
 0x3cd   : > { %v893_v53 = vpop.eup %892 }
 0x3ce   : > { %v674_v54 = vadd.f32 1.0, %v893_v53 }
 0x3d0   : > { %894 = vrcp.f32 %v674_v54 }
 0x3dd   : > { %v895_v55 = vpop.eup %894 }
 0x3de   : > { %v677_v56 = vmul.f32 100.0, %v895_v55 }
 0x3e0   : > { %679 = vst.msk [vmem:[#allocation3] sm:$0x1] %vm678_vm14, %v677_v56 }
 0x3e1 PF: > { %p1096_p10 = scmp.eq.s32.totalorder %s742_s18, 2  ;;  %s956_s30 = smov [#allocation3]  }
 0x3e2   : > { %s689_s5 = sshll.u32 %s956_s30, 4  ;;  %s690_s5 = int_to_ptr.vmem [resolvable:$true] %s689_s5 }
 0x3e3   : > { %s896_s6 = scalar_lea.vmem %s690_s5, 16  ;;  %s902_s7 = scalar_lea.vmem %s690_s5, 32 }
 0x3e4   : > { %p897_p11 = scmp.ne.s32.totalorder %s690_s5, %s896_s6  ;;  %p903_p0 = scmp.lt.s32.totalorder %s690_s5, %s690_s5 }
 0x3e5   : > { %p904_p1 = scmp.lt.s32.totalorder %s902_s7, %s896_s6 }
 0x3e6   : > { %p898_p12 = pnand %p897_p11, %p1096_p10 }
 0x3e7   : > { %p905_p2 = por %p904_p1, %p903_p0 }
 0x3e8   : > { %p899_p13 = pneg %p898_p12 }
 0x3ea   : > { %p906_p3 = pnand %p905_p2, %p899_p13 }
 0x3ec   : > { %909 = shalt.err (!%p906_p3)
}
 0x3ed   : > { %849 = dma.vmem_to_hbm [thread:$0]  (%p1096_p10), %s690_s5, 16, %s1124_s4, [#allocation4]  }
 0x3ee   : > { %933 = dma.done.wait (%p1096_p10), [#allocation4], 16  }
 0x3ef   : > { %935 = vsyncadd (%p1096_p10), [#allocation4], 4294967280 }
 0x3f0 PF: > { %s15_s17 = sadd.s32 1, %s946_s17   ;;  %s1126_s15 = smov %s942_s16 }
 0x3f1   : > { %p12_p4 = scmp.ge.s32.totalorder %s15_s17, 5   ;;  %s1127_s16 = smov %s1129_s19 }
 0x3f3   :  { %14 = sbr.rel (!%p12_p4) target bundleno = 2 (0x2), region = 88 }
 0x3f8   :  { %702 = vsyncpa [#allocation4], 1 }
 0x3f9   :  { %704 = vsyncpa [#allocation4 + $0x1], 1 }

</bundles_post_ra>
